<compile_context>
chip_gen: v7x
topology: tpu7x:2x2x1
jax: 0.10.0
libtpu: 0.0.40
codegen_flags: <defaults>
</compile_context>

<pallas_src>
import jax
import jax.numpy as jnp
from jax.experimental import pallas as pl
from jax.experimental.pallas import tpu as pltpu

LANE = 128     # lane (last-dim) alignment
SUBLANE = 16   # sublane alignment (bf16 packs 16 rows per vreg)

VMEM_SPEC = pl.BlockSpec(memory_space=pltpu.MemorySpace.VMEM)


# ------------------------------ helpers ------------------------------------ #

def _round_up(n, m):
    return ((n + m - 1) // m) * m


def _pad2d(x, rows, cols):
    r, c = x.shape
    return jnp.pad(x, ((0, rows - r), (0, cols - c)))


# ----------------------------- Pallas kernel ------------------------------- #

def _graphsage_fused_kernel(a_ref, p_ref, x_ref,
                            w0l_ref, b0l_ref, w0r_ref,
                            w1l_ref, b1l_ref, w1r_ref,
                            w2_ref, b2_ref, w3_ref, b3_ref,
                            o_ref):
    """Entire GraphSAGE forward in one kernel (everything VMEM-resident).

    aggr/pool/features/weights are bf16 (full MXU rate, half the VMEM bytes);
    every matmul accumulates in f32 via preferred_element_type; biases are f32.
    Padding columns are zero in all weights/biases, so ReLU, the L2 norm
    sum-of-squares and the pooling are unaffected by the padding.
    """
    a = a_ref[...]          # [Np, Np] bf16: A[i, j] = 1/indeg(i) for edge j -> i
    x = x_ref[...]          # [Np, Fp] bf16

    # ---- SAGEConv 0: mean aggregation -> lin_l(+bias) + lin_r -> ReLU ----
    agg0 = jnp.dot(a, x, preferred_element_type=jnp.float32)
    h = jnp.dot(agg0.astype(jnp.bfloat16), w0l_ref[...],
                preferred_element_type=jnp.float32) + b0l_ref[...]
    h = h + jnp.dot(x, w0r_ref[...], preferred_element_type=jnp.float32)
    h = jnp.maximum(h, 0.0)
    # TODO(synk): F.dropout is identity here (inference semantics); PyTorch RNG
    # dropout masks cannot be reproduced bit-exactly anyway.
    h = h.astype(jnp.bfloat16)

    # ---- SAGEConv 1: mean aggregation -> lin_l(+bias) + lin_r -> L2 normalize ----
    agg1 = jnp.dot(a, h, preferred_element_type=jnp.float32)
    h1 = jnp.dot(agg1.astype(jnp.bfloat16), w1l_ref[...],
                 preferred_element_type=jnp.float32) + b1l_ref[...]
    h1 = h1 + jnp.dot(h, w1r_ref[...], preferred_element_type=jnp.float32)
    # F.normalize(p=2, dim=-1): x / clamp_min(||x||_2, 1e-12)
    #   == x * rsqrt(max(sum(x^2), 1e-24))   (rsqrt -> EUP slot, VPU-free)
    sumsq = jnp.sum(h1 * h1, axis=-1, keepdims=True)
    h1 = h1 * jax.lax.rsqrt(jnp.maximum(sumsq, 1e-24))

    # ---- global_mean_pool: pool_mat [Bp, Np] @ h1 [Np, Hp] ----
    g = jnp.dot(p_ref[...], h1.astype(jnp.bfloat16),
                preferred_element_type=jnp.float32)

    # ---- final_post_process1 -> relu -> final_post_process2 ----
    z = jnp.dot(g.astype(jnp.bfloat16), w2_ref[...],
                preferred_element_type=jnp.float32) + b2_ref[...]
    z = jnp.maximum(z, 0.0)
    o_ref[...] = jnp.dot(z.astype(jnp.bfloat16), w3_ref[...],
                         preferred_element_type=jnp.float32) + b3_ref[...]


# --------------------------- glue / preprocessing --------------------------- #

def build_mean_aggr_matrix(edge_index, num_nodes_padded):
    """A[i, j] = 1/indeg(i) for each edge j -> i (PyG SAGEConv mean aggregation).

    Built directly at the padded size; padded nodes have no edges -> zero rows.
    """
    src = edge_index[0]
    dst = edge_index[1]
    a = jnp.zeros((num_nodes_padded, num_nodes_padded), jnp.float32)
    a = a.at[dst, src].add(1.0)
    deg = jnp.sum(a, axis=1, keepdims=True)
    return a / jnp.maximum(deg, 1.0)


def build_mean_pool_matrix(batch, num_graphs_padded, num_nodes_padded):
    """P[b, n] = 1/|graph b| if batch[n] == b. Padded nodes get sentinel -1."""
    n = batch.shape[0]
    batch_p = jnp.full((num_nodes_padded,), -1, jnp.int32)
    batch_p = batch_p.at[:n].set(batch.astype(jnp.int32))
    onehot = (batch_p[None, :] == jnp.arange(num_graphs_padded)[:, None])
    onehot = onehot.astype(jnp.float32)
    counts = jnp.sum(onehot, axis=1, keepdims=True)
    return onehot / jnp.maximum(counts, 1.0)


def init_params(key, num_node_features, nout, nhid, nhid_ff):
    """Deterministic synthetic parameters. Linear weights stored as [in, out]."""
    ks = jax.random.split(key, 8)
    s = 0.1
    return {
        # SAGEConv(num_node_features, nhid): lin_l (with bias) + lin_r (no bias)
        "conv0_wl": jax.random.normal(ks[0], (num_node_features, nhid), jnp.float32) * s,
        "conv0_bl": jax.random.normal(ks[1], (1, nhid), jnp.float32) * s,
        "conv0_wr": jax.random.normal(ks[2], (num_node_features, nhid), jnp.float32) * s,
        # SAGEConv(nhid, nhid_ff)
        "conv1_wl": jax.random.normal(ks[3], (nhid, nhid_ff), jnp.float32) * s,
        "conv1_bl": jax.random.normal(ks[4], (1, nhid_ff), jnp.float32) * s,
        "conv1_wr": jax.random.normal(ks[5], (nhid, nhid_ff), jnp.float32) * s,
        # final_post_process1: Linear(nhid_ff, nhid_ff); final_post_process2: Linear(nhid_ff, nout)
        "lin1_w": jax.random.normal(ks[6], (nhid_ff, nhid_ff), jnp.float32) * s,
        "lin1_b": jnp.zeros((1, nhid_ff), jnp.float32),
        "lin2_w": jax.random.normal(ks[7], (nhid_ff, nout), jnp.float32) * s,
        "lin2_b": jnp.zeros((1, nout), jnp.float32),
    }


def graphsage_forward(params, x, edge_index, batch, num_graphs):
    n, f_in = x.shape
    nhid = params["conv0_wl"].shape[1]
    nhid_ff = params["conv1_wl"].shape[1]
    nout = params["lin2_w"].shape[1]

    # Pad to lane-dense / sublane-aligned shapes.
    np_ = _round_up(n, SUBLANE)
    bp = _round_up(num_graphs, 8)
    fp = _round_up(f_in, LANE)
    hp = _round_up(nhid, LANE)
    gp = _round_up(nhid_ff, LANE)
    op = _round_up(nout, LANE)

    aggr = build_mean_aggr_matrix(edge_index, np_).astype(jnp.bfloat16)
    pool = build_mean_pool_matrix(batch, bp, np_).astype(jnp.bfloat16)
    xpad = _pad2d(x, np_, fp).astype(jnp.bfloat16)

    w0l = _pad2d(params["conv0_wl"], fp, hp).astype(jnp.bfloat16)
    b0l = _pad2d(params["conv0_bl"], 1, hp)
    w0r = _pad2d(params["conv0_wr"], fp, hp).astype(jnp.bfloat16)
    w1l = _pad2d(params["conv1_wl"], hp, gp).astype(jnp.bfloat16)
    b1l = _pad2d(params["conv1_bl"], 1, gp)
    w1r = _pad2d(params["conv1_wr"], hp, gp).astype(jnp.bfloat16)
    w2 = _pad2d(params["lin1_w"], gp, gp).astype(jnp.bfloat16)
    b2 = _pad2d(params["lin1_b"], 1, gp)
    w3 = _pad2d(params["lin2_w"], gp, op).astype(jnp.bfloat16)
    b3 = _pad2d(params["lin2_b"], 1, op)

    out_padded = pl.pallas_call(
        _graphsage_fused_kernel,
        out_shape=jax.ShapeDtypeStruct((bp, op), jnp.float32),
        in_specs=[VMEM_SPEC] * 13,
        out_specs=VMEM_SPEC,
        compiler_params=pltpu.CompilerParams(vmem_limit_bytes=64 * 1024 * 1024),
    )(aggr, pool, xpad, w0l, b0l, w0r, w1l, b1l, w1r, w2, b2, w3, b3)

    return out_padded[:num_graphs, :nout]


# --------------------------------- main ------------------------------------ #

if __name__ == "__main__":
    key = jax.random.PRNGKey(0)
    k_x, k_e, k_p = jax.random.split(key, 3)

    num_nodes = 16
    num_node_features = 8
    nhid = 32
    nhid_ff = 32
    nout = 8
    num_edges = 40
    num_graphs = 2

    x = jax.random.normal(k_x, (num_nodes, num_node_features), jnp.float32)
    edge_index = jax.random.randint(k_e, (2, num_edges), 0, num_nodes, jnp.int32)
    # first half of the nodes belong to graph 0, second half to graph 1
    batch = jnp.concatenate([
        jnp.zeros((num_nodes // 2,), jnp.int32),
        jnp.ones((num_nodes - num_nodes // 2,), jnp.int32),
    ])

    params = init_params(k_p, num_node_features, nout, nhid, nhid_ff)

    fwd = jax.jit(graphsage_forward, static_argnums=(4,))
    out = fwd(params, x, edge_index, batch, num_graphs)
    out = jax.block_until_ready(out)

    assert out.shape == (num_graphs, nout)
    assert bool(jnp.all(jnp.isfinite(out)))
    print("KERNEL_OK")
</pallas_src>

<mosaic_0001>
module attributes {stable_mosaic.version = 11 : i64} {
  func.func @_graphsage_fused_kernel(%arg0: memref<16x16xbf16, #tpu.memory_space<vmem>>, %arg1: memref<8x16xbf16, #tpu.memory_space<vmem>>, %arg2: memref<16x128xbf16, #tpu.memory_space<vmem>>, %arg3: memref<128x128xbf16, #tpu.memory_space<vmem>>, %arg4: memref<1x128xf32, #tpu.memory_space<vmem>>, %arg5: memref<128x128xbf16, #tpu.memory_space<vmem>>, %arg6: memref<128x128xbf16, #tpu.memory_space<vmem>>, %arg7: memref<1x128xf32, #tpu.memory_space<vmem>>, %arg8: memref<128x128xbf16, #tpu.memory_space<vmem>>, %arg9: memref<128x128xbf16, #tpu.memory_space<vmem>>, %arg10: memref<1x128xf32, #tpu.memory_space<vmem>>, %arg11: memref<128x128xbf16, #tpu.memory_space<vmem>>, %arg12: memref<1x128xf32, #tpu.memory_space<vmem>>, %arg13: memref<8x128xf32, #tpu.memory_space<vmem>>) attributes {dimension_semantics = [], scalar_prefetch = 0 : i64, scratch_operands = 0 : i64, tpu.core_type = #tpu.core_type<tc>} {
    %c0 = arith.constant 0 : index
    %c0_0 = arith.constant 0 : index
    %0 = vector.load %arg0[%c0, %c0_0] : memref<16x16xbf16, #tpu.memory_space<vmem>>, vector<16x16xbf16>
    %c0_1 = arith.constant 0 : index
    %c0_2 = arith.constant 0 : index
    %1 = vector.load %arg2[%c0_1, %c0_2] : memref<16x128xbf16, #tpu.memory_space<vmem>>, vector<16x128xbf16>
    %cst = arith.constant dense<0.000000e+00> : vector<16x128xf32>
    %2 = tpu.matmul %0, %1, %cst {dimension_numbers = #tpu.dot_dimension_numbers<[1], [0], [0], [1], [0, 0, 1, 1], [], []>} : vector<16x16xbf16>, vector<16x128xbf16>, vector<16x128xf32> -> vector<16x128xf32>
    %3 = arith.truncf %2 : vector<16x128xf32> to vector<16x128xbf16>
    %c0_3 = arith.constant 0 : index
    %c0_4 = arith.constant 0 : index
    %4 = vector.load %arg3[%c0_3, %c0_4] : memref<128x128xbf16, #tpu.memory_space<vmem>>, vector<128x128xbf16>
    %cst_5 = arith.constant dense<0.000000e+00> : vector<16x128xf32>
    %5 = tpu.matmul %3, %4, %cst_5 {dimension_numbers = #tpu.dot_dimension_numbers<[1], [0], [0], [1], [0, 0, 1, 1], [], []>} : vector<16x128xbf16>, vector<128x128xbf16>, vector<16x128xf32> -> vector<16x128xf32>
    %c0_6 = arith.constant 0 : index
    %c0_7 = arith.constant 0 : index
    %6 = vector.load %arg4[%c0_6, %c0_7] : memref<1x128xf32, #tpu.memory_space<vmem>>, vector<1x128xf32>
    %7 = vector.broadcast %6 : vector<1x128xf32> to vector<16x128xf32>
    %8 = arith.addf %5, %7 : vector<16x128xf32>
    %c0_8 = arith.constant 0 : index
    %c0_9 = arith.constant 0 : index
    %9 = vector.load %arg5[%c0_8, %c0_9] : memref<128x128xbf16, #tpu.memory_space<vmem>>, vector<128x128xbf16>
    %cst_10 = arith.constant dense<0.000000e+00> : vector<16x128xf32>
    %10 = tpu.matmul %1, %9, %cst_10 {dimension_numbers = #tpu.dot_dimension_numbers<[1], [0], [0], [1], [0, 0, 1, 1], [], []>} : vector<16x128xbf16>, vector<128x128xbf16>, vector<16x128xf32> -> vector<16x128xf32>
    %11 = arith.addf %8, %10 : vector<16x128xf32>
    %cst_11 = arith.constant 0.000000e+00 : f32
    %12 = vector.broadcast %cst_11 : f32 to vector<16x128xf32>
    %13 = arith.maximumf %11, %12 : vector<16x128xf32>
    %14 = arith.truncf %13 : vector<16x128xf32> to vector<16x128xbf16>
    %cst_12 = arith.constant dense<0.000000e+00> : vector<16x128xf32>
    %15 = tpu.matmul %0, %14, %cst_12 {dimension_numbers = #tpu.dot_dimension_numbers<[1], [0], [0], [1], [0, 0, 1, 1], [], []>} : vector<16x16xbf16>, vector<16x128xbf16>, vector<16x128xf32> -> vector<16x128xf32>
    %16 = arith.truncf %15 : vector<16x128xf32> to vector<16x128xbf16>
    %c0_13 = arith.constant 0 : index
    %c0_14 = arith.constant 0 : index
    %17 = vector.load %arg6[%c0_13, %c0_14] : memref<128x128xbf16, #tpu.memory_space<vmem>>, vector<128x128xbf16>
    %cst_15 = arith.constant dense<0.000000e+00> : vector<16x128xf32>
    %18 = tpu.matmul %16, %17, %cst_15 {dimension_numbers = #tpu.dot_dimension_numbers<[1], [0], [0], [1], [0, 0, 1, 1], [], []>} : vector<16x128xbf16>, vector<128x128xbf16>, vector<16x128xf32> -> vector<16x128xf32>
    %c0_16 = arith.constant 0 : index
    %c0_17 = arith.constant 0 : index
    %19 = vector.load %arg7[%c0_16, %c0_17] : memref<1x128xf32, #tpu.memory_space<vmem>>, vector<1x128xf32>
    %20 = vector.broadcast %19 : vector<1x128xf32> to vector<16x128xf32>
    %21 = arith.addf %18, %20 : vector<16x128xf32>
    %c0_18 = arith.constant 0 : index
    %c0_19 = arith.constant 0 : index
    %22 = vector.load %arg8[%c0_18, %c0_19] : memref<128x128xbf16, #tpu.memory_space<vmem>>, vector<128x128xbf16>
    %cst_20 = arith.constant dense<0.000000e+00> : vector<16x128xf32>
    %23 = tpu.matmul %14, %22, %cst_20 {dimension_numbers = #tpu.dot_dimension_numbers<[1], [0], [0], [1], [0, 0, 1, 1], [], []>} : vector<16x128xbf16>, vector<128x128xbf16>, vector<16x128xf32> -> vector<16x128xf32>
    %24 = arith.addf %21, %23 : vector<16x128xf32>
    %25 = arith.mulf %24, %24 : vector<16x128xf32>
    %cst_21 = arith.constant dense<0.000000e+00> : vector<16xf32>
    %26 = vector.multi_reduction <add>, %25, %cst_21 [1] : vector<16x128xf32> to vector<16xf32>
    %27 = vector.shape_cast %26 : vector<16xf32> to vector<16x1xf32>
    %cst_22 = arith.constant 1.000000e-24 : f32
    %28 = vector.broadcast %cst_22 : f32 to vector<16x1xf32>
    %29 = arith.maximumf %27, %28 : vector<16x1xf32>
    %30 = math.rsqrt %29 : vector<16x1xf32>
    %31 = vector.broadcast %30 : vector<16x1xf32> to vector<16x128xf32>
    %32 = arith.mulf %24, %31 : vector<16x128xf32>
    %c0_23 = arith.constant 0 : index
    %c0_24 = arith.constant 0 : index
    %33 = vector.load %arg1[%c0_23, %c0_24] : memref<8x16xbf16, #tpu.memory_space<vmem>>, vector<8x16xbf16>
    %34 = arith.truncf %32 : vector<16x128xf32> to vector<16x128xbf16>
    %cst_25 = arith.constant dense<0.000000e+00> : vector<8x128xf32>
    %35 = tpu.matmul %33, %34, %cst_25 {dimension_numbers = #tpu.dot_dimension_numbers<[1], [0], [0], [1], [0, 0, 1, 1], [], []>} : vector<8x16xbf16>, vector<16x128xbf16>, vector<8x128xf32> -> vector<8x128xf32>
    %36 = arith.truncf %35 : vector<8x128xf32> to vector<8x128xbf16>
    %c0_26 = arith.constant 0 : index
    %c0_27 = arith.constant 0 : index
    %37 = vector.load %arg9[%c0_26, %c0_27] : memref<128x128xbf16, #tpu.memory_space<vmem>>, vector<128x128xbf16>
    %cst_28 = arith.constant dense<0.000000e+00> : vector<8x128xf32>
    %38 = tpu.matmul %36, %37, %cst_28 {dimension_numbers = #tpu.dot_dimension_numbers<[1], [0], [0], [1], [0, 0, 1, 1], [], []>} : vector<8x128xbf16>, vector<128x128xbf16>, vector<8x128xf32> -> vector<8x128xf32>
    %c0_29 = arith.constant 0 : index
    %c0_30 = arith.constant 0 : index
    %39 = vector.load %arg10[%c0_29, %c0_30] : memref<1x128xf32, #tpu.memory_space<vmem>>, vector<1x128xf32>
    %40 = vector.broadcast %39 : vector<1x128xf32> to vector<8x128xf32>
    %41 = arith.addf %38, %40 : vector<8x128xf32>
    %cst_31 = arith.constant 0.000000e+00 : f32
    %42 = vector.broadcast %cst_31 : f32 to vector<8x128xf32>
    %43 = arith.maximumf %41, %42 : vector<8x128xf32>
    %44 = arith.truncf %43 : vector<8x128xf32> to vector<8x128xbf16>
    %c0_32 = arith.constant 0 : index
    %c0_33 = arith.constant 0 : index
    %45 = vector.load %arg11[%c0_32, %c0_33] : memref<128x128xbf16, #tpu.memory_space<vmem>>, vector<128x128xbf16>
    %cst_34 = arith.constant dense<0.000000e+00> : vector<8x128xf32>
    %46 = tpu.matmul %44, %45, %cst_34 {dimension_numbers = #tpu.dot_dimension_numbers<[1], [0], [0], [1], [0, 0, 1, 1], [], []>} : vector<8x128xbf16>, vector<128x128xbf16>, vector<8x128xf32> -> vector<8x128xf32>
    %c0_35 = arith.constant 0 : index
    %c0_36 = arith.constant 0 : index
    %47 = vector.load %arg12[%c0_35, %c0_36] : memref<1x128xf32, #tpu.memory_space<vmem>>, vector<1x128xf32>
    %48 = vector.broadcast %47 : vector<1x128xf32> to vector<8x128xf32>
    %49 = arith.addf %46, %48 : vector<8x128xf32>
    %c0_37 = arith.constant 0 : index
    %c0_38 = arith.constant 0 : index
    %50 = vector.load %arg13[%c0_37, %c0_38] : memref<8x128xf32, #tpu.memory_space<vmem>>, vector<8x128xf32>
    tpu.vector_store %arg13[%c0_37, %c0_38], %49 {strides = array<i32>} : memref<8x128xf32, #tpu.memory_space<vmem>>, vector<8x128xf32>,
    return
  }
}

</mosaic_0001>

<bundles_post_ra>
// kernel: graphsage_forward.1
= control target key start
LH: loop header
LB: loop body
LE: loop exit
PB: predicated region body
PF: predicated region fallthrough
CT: control target
= control target key end

     0   :  { %18 = vsyncpa [#allocation3], 0  ;;  %s2079_s0 = inlined_call_operand.hbm [shape: bf16[16,16], index: 0, kind: input, shape index: {}]   ;;  %s2080_s1 = inlined_call_operand.hbm [shape: bf16[8,16], index: 1, kind: input, shape index: {}]   ;;  %s2081_s2 = inlined_call_operand.hbm [shape: bf16[16,128], index: 2, kind: input, shape index: {}]   ;;  %s2082_s3 = inlined_call_operand.hbm [shape: bf16[128,128], index: 3, kind: input, shape index: {}]   ;;  %s2083_s4 = inlined_call_operand.hbm [shape: f32[1,128], index: 4, kind: input, shape index: {}]   ;;  %s2084_s5 = inlined_call_operand.hbm [shape: bf16[128,128], index: 5, kind: input, shape index: {}]   ;;  %s2085_s6 = inlined_call_operand.hbm [shape: bf16[128,128], index: 6, kind: input, shape index: {}]   ;;  %s2086_s7 = inlined_call_operand.hbm [shape: f32[1,128], index: 7, kind: input, shape index: {}]   ;;  %s2087_s8 = inlined_call_operand.hbm [shape: bf16[128,128], index: 8, kind: input, shape index: {}]   ;;  %s2088_s9 = inlined_call_operand.hbm [shape: bf16[128,128], index: 9, kind: input, shape index: {}]   ;;  %s2089_s10 = inlined_call_operand.hbm [shape: f32[1,128], index: 10, kind: input, shape index: {}]   ;;  %s2090_s11 = inlined_call_operand.hbm [shape: bf16[128,128], index: 11, kind: input, shape index: {}]   ;;  %s2091_s12 = inlined_call_operand.hbm [shape: f32[1,128], index: 12, kind: input, shape index: {}]   ;;  %s2092_s13 = inlined_call_operand.hbm [shape: f32[8,128], index: 13, kind: output, shape index: {}]  }
   0x1   :  { %19 = vsyncpa [#allocation6], 0 }
   0x2   :  { %20 = vsyncpa [#allocation9], 0 }
   0x3   :  { %21 = vsyncpa [#allocation12], 0 }
   0x4   :  { %22 = vsyncpa [#allocation15], 0 }
   0x5   :  { %23 = vsyncpa [#allocation18], 0 }
   0x6   :  { %24 = vsyncpa [#allocation21], 0 }
   0x7   :  { %25 = vsyncpa [#allocation4], 0  ;;  %s1723_s25 = smov [#allocation5]   ;;  %s1399_s29 = scalar_lea.hbm %s2080_s1, 64 }
   0x8   :  { %s44_s26 = sshll.u32 %s1723_s25, 4  ;;  %p1400_p0 = scmp.ne.s32.totalorder %s2080_s1, %s1399_s29  ;;  %s45_s26 = int_to_ptr.vmem [resolvable:$true] %s44_s26 }
   0x9   :  { %p1403_p1 = scmp.lt.u32.totalorder %s1399_s29, %s2080_s1 }
   0xb   :  { %p1405_p2 = pnand %p1403_p1, %p1400_p0 }
   0xd   :  { %1408 = shalt.err (!%p1405_p2)
}
   0xe   :  { %s1409_s17 = scalar_lea.vmem %s45_s26, 64  ;;  %p1414_p4 = scmp.lt.s32.totalorder %s45_s26, %s45_s26 }
   0xf   :  { %p1410_p3 = scmp.ne.s32.totalorder %s45_s26, %s1409_s17  ;;  %p1415_p5 = scmp.lt.s32.totalorder %s1409_s17, %s1409_s17 }
  0x11   :  { %p1416_p6 = por %p1415_p5, %p1414_p4 }
  0x13   :  { %p1417_p7 = pnand %p1416_p6, %p1410_p3 }
  0x15   :  { %1420 = shalt.err (!%p1417_p7)
}
  0x16   :  { %47 = dma.hbm_to_vmem [thread:$0]  %s2080_s1, 64, %s45_s26, [#allocation6]  }
  0x17   :  { %s1724_s20 = smov [#allocation8]   ;;  %s1725_s22 = smov [#allocation11]  }
  0x18   :  { %s65_s21 = sshll.u32 %s1724_s20, 4  ;;  %s87_s23 = sshll.u32 %s1725_s22, 4  ;;  %s66_s21 = int_to_ptr.vmem [resolvable:$true] %s65_s21  ;;  %s88_s23 = int_to_ptr.vmem [resolvable:$true] %s87_s23 }
  0x19   :  { %s1421_s27 = scalar_lea.hbm %s2082_s3, 1024 }
  0x1a   :  { %p1422_p8 = scmp.ne.s32.totalorder %s2082_s3, %s1421_s27  ;;  %p1425_p9 = scmp.lt.u32.totalorder %s1421_s27, %s2082_s3 }
  0x1c   :  { %p1427_p10 = pnand %p1425_p9, %p1422_p8 }
  0x1e   :  { %1430 = shalt.err (!%p1427_p10)
}
  0x1f   :  { %s1431_s1 = scalar_lea.vmem %s66_s21, 1024  ;;  %p1436_p12 = scmp.lt.s32.totalorder %s66_s21, %s66_s21 }
  0x20   :  { %p1432_p11 = scmp.ne.s32.totalorder %s66_s21, %s1431_s1  ;;  %p1437_p13 = scmp.lt.s32.totalorder %s1431_s1, %s1431_s1 }
  0x22   :  { %p1438_p0 = por %p1437_p13, %p1436_p12 }
  0x24   :  { %p1439_p1 = pnand %p1438_p0, %p1432_p11 }
  0x26   :  { %1442 = shalt.err (!%p1439_p1)
}
  0x27   :  { %s1726_s26 = smov 64   ;;  %s1727_s15 = smov 4  }
  0x28   :  { %71 = dma.hbm_to_vmem [thread:$0]  %s2082_s3, 1024, %s66_s21, [#allocation9], %s1726_s26, %s1726_s26, %s1727_s15  }
  0x29   :  { %s1443_s20 = scalar_lea.hbm %s2084_s5, 1024 }
  0x2a   :  { %p1444_p2 = scmp.ne.s32.totalorder %s2084_s5, %s1443_s20  ;;  %p1447_p3 = scmp.lt.u32.totalorder %s1443_s20, %s2084_s5 }
  0x2c   :  { %p1449_p4 = pnand %p1447_p3, %p1444_p2 }
  0x2e   :  { %1452 = shalt.err (!%p1449_p4)
}
  0x2f   :  { %s1453_s28 = scalar_lea.vmem %s88_s23, 1024  ;;  %p1458_p6 = scmp.lt.s32.totalorder %s88_s23, %s88_s23 }
  0x30   :  { %p1454_p5 = scmp.ne.s32.totalorder %s88_s23, %s1453_s28  ;;  %p1459_p7 = scmp.lt.s32.totalorder %s1453_s28, %s1453_s28 }
  0x32   :  { %p1460_p8 = por %p1459_p7, %p1458_p6 }
  0x34   :  { %p1461_p9 = pnand %p1460_p8, %p1454_p5 }
  0x36   :  { %1464 = shalt.err (!%p1461_p9)
}
  0x37   :  { %93 = dma.hbm_to_vmem [thread:$0]  %s2084_s5, 1024, %s88_s23, [#allocation12], %s1726_s26, %s1726_s26, %s1727_s15  }
  0x38   :  { %s1728_s29 = smov [#allocation14]   ;;  %s1729_s14 = smov [#allocation17]  }
  0x39   :  { %s112_s30 = sshll.u32 %s1728_s29, 4  ;;  %s133_s1 = sshll.u32 %s1729_s14, 4  ;;  %s113_s30 = int_to_ptr.vmem [resolvable:$true] %s112_s30  ;;  %s134_s1 = int_to_ptr.vmem [resolvable:$true] %s133_s1 }
  0x3a   :  { %s1465_s18 = scalar_lea.hbm %s2086_s7, 16 }
  0x3b   :  { %p1466_p10 = scmp.ne.s32.totalorder %s2086_s7, %s1465_s18  ;;  %p1469_p11 = scmp.lt.u32.totalorder %s1465_s18, %s2086_s7 }
  0x3d   :  { %p1471_p12 = pnand %p1469_p11, %p1466_p10 }
  0x3f   :  { %1474 = shalt.err (!%p1471_p12)
}
  0x40   :  { %s1475_s5 = scalar_lea.vmem %s113_s30, 16  ;;  %s1479_s23 = scalar_lea.vmem %s113_s30, 32 }
  0x41   :  { %p1476_p13 = scmp.ne.s32.totalorder %s113_s30, %s1475_s5  ;;  %p1480_p0 = scmp.lt.s32.totalorder %s113_s30, %s113_s30 }
  0x42   :  { %p1481_p1 = scmp.lt.s32.totalorder %s1479_s23, %s1475_s5 }
  0x44   :  { %p1482_p2 = por %p1481_p1, %p1480_p0 }
  0x46   :  { %p1483_p3 = pnand %p1482_p2, %p1476_p13 }
  0x48   :  { %1486 = shalt.err (!%p1483_p3)
}
  0x49   :  { %115 = dma.hbm_to_vmem [thread:$0]  %s2086_s7, 16, %s113_s30, [#allocation15]  }
  0x4a   :  { %s1487_s21 = scalar_lea.hbm %s2088_s9, 1024 }
  0x4b   :  { %p1488_p4 = scmp.ne.s32.totalorder %s2088_s9, %s1487_s21  ;;  %p1491_p5 = scmp.lt.u32.totalorder %s1487_s21, %s2088_s9 }
  0x4d   :  { %p1493_p6 = pnand %p1491_p5, %p1488_p4 }
  0x4f   :  { %1496 = shalt.err (!%p1493_p6)
}
  0x50   :  { %s1497_s18 = scalar_lea.vmem %s134_s1, 1024  ;;  %p1502_p8 = scmp.lt.s32.totalorder %s134_s1, %s134_s1 }
  0x51   :  { %p1498_p7 = scmp.ne.s32.totalorder %s134_s1, %s1497_s18  ;;  %p1503_p9 = scmp.lt.s32.totalorder %s1497_s18, %s1497_s18 }
  0x53   :  { %p1504_p10 = por %p1503_p9, %p1502_p8 }
  0x55   :  { %p1505_p11 = pnand %p1504_p10, %p1498_p7 }
  0x57   :  { %1508 = shalt.err (!%p1505_p11)
}
  0x58   :  { %139 = dma.hbm_to_vmem [thread:$0]  %s2088_s9, 1024, %s134_s1, [#allocation18], %s1726_s26, %s1726_s26, %s1727_s15  }
  0x59   :  { %s1730_s19 = smov [#allocation20]   ;;  %s1731_s22 = smov [#allocation2]  }
  0x5a   :  { %s155_s20 = sshll.u32 %s1730_s19, 4  ;;  %s31_s24 = sshll.u32 %s1731_s22, 4  ;;  %s156_s20 = int_to_ptr.vmem [resolvable:$true] %s155_s20  ;;  %s32_s24 = int_to_ptr.vmem [resolvable:$true] %s31_s24 }
  0x5b   :  { %s1509_s25 = scalar_lea.hbm %s2090_s11, 1024 }
  0x5c   :  { %p1510_p12 = scmp.ne.s32.totalorder %s2090_s11, %s1509_s25  ;;  %p1513_p13 = scmp.lt.u32.totalorder %s1509_s25, %s2090_s11 }
  0x5e   :  { %p1515_p0 = pnand %p1513_p13, %p1510_p12 }
  0x60   :  { %1518 = shalt.err (!%p1515_p0)
}
  0x61   :  { %s1519_s9 = scalar_lea.vmem %s156_s20, 1024  ;;  %p1524_p2 = scmp.lt.s32.totalorder %s156_s20, %s156_s20 }
  0x62   :  { %p1520_p1 = scmp.ne.s32.totalorder %s156_s20, %s1519_s9  ;;  %p1525_p3 = scmp.lt.s32.totalorder %s1519_s9, %s1519_s9 }
  0x64   :  { %p1526_p4 = por %p1525_p3, %p1524_p2 }
  0x66   :  { %p1527_p5 = pnand %p1526_p4, %p1520_p1 }
  0x68   :  { %1530 = shalt.err (!%p1527_p5)
}
  0x69   :  { %161 = dma.hbm_to_vmem [thread:$0]  %s2090_s11, 1024, %s156_s20, [#allocation21], %s1726_s26, %s1726_s26, %s1727_s15  }
  0x6a   :  { %s1531_s17 = scalar_lea.hbm %s2079_s0, 128 }
  0x6b   :  { %p1532_p6 = scmp.ne.s32.totalorder %s2079_s0, %s1531_s17  ;;  %p1535_p7 = scmp.lt.u32.totalorder %s1531_s17, %s2079_s0 }
  0x6d   :  { %p1537_p8 = pnand %p1535_p7, %p1532_p6 }
  0x6f   :  { %1540 = shalt.err (!%p1537_p8)
}
  0x70   :  { %s1541_s22 = scalar_lea.vmem %s32_s24, 128  ;;  %p1546_p10 = scmp.lt.s32.totalorder %s32_s24, %s32_s24 }
  0x71   :  { %p1542_p9 = scmp.ne.s32.totalorder %s32_s24, %s1541_s22  ;;  %p1547_p11 = scmp.lt.s32.totalorder %s1541_s22, %s1541_s22 }
  0x73   :  { %p1548_p12 = por %p1547_p11, %p1546_p10 }
  0x75   :  { %p1549_p13 = pnand %p1548_p12, %p1542_p9 }
  0x77   :  { %1552 = shalt.err (!%p1549_p13)
}
  0x78   :  { %37 = dma.hbm_to_vmem [thread:$0]  %s2079_s0, 128, %s32_s24, [#allocation3], %s1726_s26, %s1726_s26, %s1727_s15  }
  0x79   :  { %s1732_s5 = smov [#allocation7]   ;;  %s1733_s25 = smov [#allocation10]  }
  0x7a   :  { %s53_s23 = sshll.u32 %s1732_s5, 4  ;;  %s78_s27 = sshll.u32 %s1733_s25, 4  ;;  %s54_s23 = int_to_ptr.vmem [resolvable:$true] %s53_s23  ;;  %s79_s27 = int_to_ptr.vmem [resolvable:$true] %s78_s27 }
  0x7b   :  { %s1553_s21 = scalar_lea.hbm %s2081_s2, 128 }
  0x7c   :  { %p1554_p0 = scmp.ne.s32.totalorder %s2081_s2, %s1553_s21  ;;  %p1557_p1 = scmp.lt.u32.totalorder %s1553_s21, %s2081_s2 }
  0x7e   :  { %p1559_p2 = pnand %p1557_p1, %p1554_p0 }
  0x80   :  { %1562 = shalt.err (!%p1559_p2)
}
  0x81   :  { %s1563_s0 = scalar_lea.vmem %s54_s23, 128  ;;  %p1568_p4 = scmp.lt.s32.totalorder %s54_s23, %s54_s23 }
  0x82   :  { %p1564_p3 = scmp.ne.s32.totalorder %s54_s23, %s1563_s0  ;;  %p1569_p5 = scmp.lt.s32.totalorder %s1563_s0, %s1563_s0 }
  0x84   :  { %p1570_p6 = por %p1569_p5, %p1568_p4 }
  0x86   :  { %p1571_p7 = pnand %p1570_p6, %p1564_p3 }
  0x88   :  { %1574 = shalt.err (!%p1571_p7)
}
  0x89   :  { %59 = dma.hbm_to_vmem [thread:$0]  %s2081_s2, 128, %s54_s23, [#allocation6], %s1726_s26, %s1726_s26, %s1727_s15  }
  0x8a   :  { %s1575_s7 = scalar_lea.hbm %s2083_s4, 16 }
  0x8b   :  { %p1576_p8 = scmp.ne.s32.totalorder %s2083_s4, %s1575_s7  ;;  %p1579_p9 = scmp.lt.u32.totalorder %s1575_s7, %s2083_s4 }
  0x8d   :  { %p1581_p10 = pnand %p1579_p9, %p1576_p8 }
  0x8f   :  { %1584 = shalt.err (!%p1581_p10)
}
  0x90   :  { %s1585_s20 = scalar_lea.vmem %s79_s27, 16  ;;  %s1589_s5 = scalar_lea.vmem %s79_s27, 32 }
  0x91   :  { %p1586_p11 = scmp.ne.s32.totalorder %s79_s27, %s1585_s20  ;;  %p1590_p12 = scmp.lt.s32.totalorder %s79_s27, %s79_s27 }
  0x92   :  { %p1591_p13 = scmp.lt.s32.totalorder %s1589_s5, %s1585_s20 }
  0x94   :  { %p1592_p0 = por %p1591_p13, %p1590_p12 }
  0x96   :  { %p1593_p1 = pnand %p1592_p0, %p1586_p11 }
  0x98   :  { %1596 = shalt.err (!%p1593_p1)
}
  0x99   :  { %81 = dma.hbm_to_vmem [thread:$0]  %s2083_s4, 16, %s79_s27, [#allocation9]  }
  0x9a   :  { %s1734_s25 = smov [#allocation13]   ;;  %s1735_s3 = smov [#allocation16]  }
  0x9b   :  { %s99_s28 = sshll.u32 %s1734_s25, 4  ;;  %s121_s21 = sshll.u32 %s1735_s3, 4  ;;  %s100_s28 = int_to_ptr.vmem [resolvable:$true] %s99_s28  ;;  %s122_s21 = int_to_ptr.vmem [resolvable:$true] %s121_s21 }
  0x9c   :  { %s1597_s29 = scalar_lea.hbm %s2085_s6, 1024 }
  0x9d   :  { %p1598_p2 = scmp.ne.s32.totalorder %s2085_s6, %s1597_s29  ;;  %p1601_p3 = scmp.lt.u32.totalorder %s1597_s29, %s2085_s6 }
  0x9f   :  { %p1603_p4 = pnand %p1601_p3, %p1598_p2 }
  0xa1   :  { %1606 = shalt.err (!%p1603_p4)
}
  0xa2   :  { %s1607_s4 = scalar_lea.vmem %s100_s28, 1024  ;;  %p1612_p6 = scmp.lt.s32.totalorder %s100_s28, %s100_s28 }
  0xa3   :  { %p1608_p5 = scmp.ne.s32.totalorder %s100_s28, %s1607_s4  ;;  %p1613_p7 = scmp.lt.s32.totalorder %s1607_s4, %s1607_s4 }
  0xa5   :  { %p1614_p8 = por %p1613_p7, %p1612_p6 }
  0xa7   :  { %p1615_p9 = pnand %p1614_p8, %p1608_p5 }
  0xa9   :  { %1618 = shalt.err (!%p1615_p9)
}
  0xaa   :  { %105 = dma.hbm_to_vmem [thread:$0]  %s2085_s6, 1024, %s100_s28, [#allocation12], %s1726_s26, %s1726_s26, %s1727_s15  }
  0xab   :  { %s1619_s30 = scalar_lea.hbm %s2087_s8, 1024 }
  0xac   :  { %p1620_p10 = scmp.ne.s32.totalorder %s2087_s8, %s1619_s30  ;;  %p1623_p11 = scmp.lt.u32.totalorder %s1619_s30, %s2087_s8 }
  0xae   :  { %p1625_p12 = pnand %p1623_p11, %p1620_p10 }
  0xb0   :  { %1628 = shalt.err (!%p1625_p12)
}
  0xb1   :  { %s1629_s5 = scalar_lea.vmem %s122_s21, 1024  ;;  %p1634_p0 = scmp.lt.s32.totalorder %s122_s21, %s122_s21 }
  0xb2   :  { %p1630_p13 = scmp.ne.s32.totalorder %s122_s21, %s1629_s5  ;;  %p1635_p1 = scmp.lt.s32.totalorder %s1629_s5, %s1629_s5 }
  0xb4   :  { %p1636_p2 = por %p1635_p1, %p1634_p0 }
  0xb6   :  { %p1637_p3 = pnand %p1636_p2, %p1630_p13 }
  0xb8   :  { %1640 = shalt.err (!%p1637_p3)
}
  0xb9   :  { %127 = dma.hbm_to_vmem [thread:$0]  %s2087_s8, 1024, %s122_s21, [#allocation15], %s1726_s26, %s1726_s26, %s1727_s15  }
  0xba   :  { %s1736_s23 = smov [#allocation19]   ;;  %s1737_s28 = smov [#allocation22]  }
  0xbb   :  { %s146_s25 = sshll.u32 %s1736_s23, 4  ;;  %s168_s3 = sshll.u32 %s1737_s28, 4  ;;  %s147_s25 = int_to_ptr.vmem [resolvable:$true] %s146_s25  ;;  %s169_s3 = int_to_ptr.vmem [resolvable:$true] %s168_s3 }
  0xbc   :  { %s1641_s29 = scalar_lea.hbm %s2089_s10, 16 }
  0xbd   :  { %p1642_p4 = scmp.ne.s32.totalorder %s2089_s10, %s1641_s29  ;;  %p1645_p5 = scmp.lt.u32.totalorder %s1641_s29, %s2089_s10 }
  0xbf   :  { %p1647_p6 = pnand %p1645_p5, %p1642_p4 }
  0xc1   :  { %1650 = shalt.err (!%p1647_p6)
}
  0xc2   :  { %s1651_s8 = scalar_lea.vmem %s147_s25, 16  ;;  %s1655_s26 = scalar_lea.vmem %s147_s25, 32 }
  0xc3   :  { %p1652_p7 = scmp.ne.s32.totalorder %s147_s25, %s1651_s8  ;;  %p1656_p8 = scmp.lt.s32.totalorder %s147_s25, %s147_s25 }
  0xc4   :  { %p1657_p9 = scmp.lt.s32.totalorder %s1655_s26, %s1651_s8 }
  0xc6   :  { %p1658_p10 = por %p1657_p9, %p1656_p8 }
  0xc8   :  { %p1659_p11 = pnand %p1658_p10, %p1652_p7 }
  0xca   :  { %1662 = shalt.err (!%p1659_p11)
}
  0xcb   :  { %149 = dma.hbm_to_vmem [thread:$0]  %s2089_s10, 16, %s147_s25, [#allocation18]  }
  0xcc   :  { %s1663_s17 = scalar_lea.hbm %s2091_s12, 16 }
  0xcd   :  { %p1664_p12 = scmp.ne.s32.totalorder %s2091_s12, %s1663_s17  ;;  %p1667_p13 = scmp.lt.u32.totalorder %s1663_s17, %s2091_s12 }
  0xcf   :  { %p1669_p0 = pnand %p1667_p13, %p1664_p12 }
  0xd1   :  { %1672 = shalt.err (!%p1669_p0)
}
  0xd2   :  { %s1673_s22 = scalar_lea.vmem %s169_s3, 16  ;;  %s1677_s11 = scalar_lea.vmem %s169_s3, 32 }
  0xd3   :  { %p1674_p1 = scmp.ne.s32.totalorder %s169_s3, %s1673_s22  ;;  %p1678_p2 = scmp.lt.s32.totalorder %s169_s3, %s169_s3 }
  0xd4   :  { %p1679_p3 = scmp.lt.s32.totalorder %s1677_s11, %s1673_s22 }
  0xd6   :  { %p1680_p4 = por %p1679_p3, %p1678_p2 }
  0xd8   :  { %p1681_p5 = pnand %p1680_p4, %p1674_p1 }
  0xda   :  { %1684 = shalt.err (!%p1681_p5)
}
  0xdb   :  { %171 = dma.hbm_to_vmem [thread:$0]  %s2091_s12, 16, %s169_s3, [#allocation21]  }
  0xdc   :  { %1707 = dma.done.wait [#allocation3], 128  }
  0xdd   :  { %1708 = vsyncadd [#allocation3], 4294967168 }
  0xde   :  { %1709 = dma.done.wait [#allocation6], 192  }
  0xdf   :  { %1710 = vsyncadd [#allocation6], 4294967104 }
  0xe0   :  { %1711 = dma.done.wait [#allocation9], 1040  }
  0xe1   :  { %1712 = vsyncadd [#allocation9], 4294966256 }
  0xe2   :  { %1713 = dma.done.wait [#allocation12], 2048  }
  0xe3   :  { %1714 = vsyncadd [#allocation12], 4294965248 }
  0xe4   :  { %1715 = dma.done.wait [#allocation15], 1040  }
  0xe5   :  { %1716 = vsyncadd [#allocation15], 4294966256 }
  0xe6   :  { %1717 = dma.done.wait [#allocation18], 1040  }
  0xe7   :  { %1718 = vsyncadd [#allocation18], 4294966256 }
  0xe8   :  { %1719 = dma.done.wait [#allocation21], 1040  }
  0xe9   :  { %1720 = vsyncadd [#allocation21], 4294966256  ;;  %v1738_v0 = vmov 0.0   ;;  %vm1739_vm0 = vmmov 0   ;;  %v1345_v1 = vld [vmem:[#allocation7] sm:$0xff]   ;;  %v1997_v2 = vld [vmem:[#allocation2] sm:$0xff]  }
  0xea   :  { %1177 = vmatprep.subr.bf16.mxu0 %v1738_v0  ;;  %1179 = vmatprep.mubr.msk.bf16.mxu0 %vm1739_vm0, %v1738_v0  ;;  %vm227_vm1 = vcmask 130048   ;;  %v1347_v3 = vld [vmem:[#allocation8] sm:$0xff]   ;;  %v1348_v4 = vld [vmem:[#allocation8 + $0x8] sm:$0xff]   ;;  %v1349_v5 = vld [vmem:[#allocation8 + $0x10] sm:$0xff]   ;;  %s1740_s12 = smov [#allocation23]  }
  0xeb   :  { %1183 = vmatprep.subr.bf16.mxu1 %v1738_v0  ;;  %1199 = vmatprep.mubr.msk.bf16.mxu1 %vm1739_vm0, %v1738_v0  ;;  %v1350_v6 = vld [vmem:[#allocation8 + $0x18] sm:$0xff]   ;;  %v1351_v7 = vld [vmem:[#allocation8 + $0x20] sm:$0xff]   ;;  %v1352_v8 = vld [vmem:[#allocation8 + $0x28] sm:$0xff]   ;;  %s1045_s5 = sshll.u32 %s1740_s12, 4  ;;  %s1046_s5 = int_to_ptr.vmem [resolvable:$true] %s1045_s5 }
  0xec   :  { %1178 = vmatpush3.bf16.msra.mxu0 %v1345_v1  ;;  %1184 = vmatpush3.bf16.msra.mxu1 %v1347_v3  ;;  %v1353_v9 = vld [vmem:[#allocation8 + $0x30] sm:$0xff]   ;;  %v1354_v10 = vld [vmem:[#allocation8 + $0x38] sm:$0xff]   ;;  %v1355_v14 = vld [vmem:[#allocation11] sm:$0xff]   ;;  %s1685_s6 = scalar_lea.vmem %s1046_s5, 128  ;;  %p1690_p7 = scmp.lt.s32.totalorder %s1046_s5, %s1046_s5 }
  0xed   :  { %1223 = vmatprep.subr.bf16.mxu0 %v1738_v0  ;;  %1185 = vmatprep.subr.bf16.mxu1 %v1738_v0  ;;  %v1356_v17 = vld [vmem:[#allocation11 + $0x8] sm:$0xff]   ;;  %v1357_v18 = vld [vmem:[#allocation11 + $0x10] sm:$0xff]   ;;  %v1358_v19 = vld [vmem:[#allocation11 + $0x18] sm:$0xff]   ;;  %p1686_p6 = scmp.ne.s32.totalorder %s1046_s5, %s1685_s6  ;;  %p1691_p8 = scmp.lt.s32.totalorder %s1685_s6, %s1685_s6 }
  0xee   :  { %v1359_v20 = vld [vmem:[#allocation11 + $0x20] sm:$0xff]   ;;  %v1360_v21 = vld [vmem:[#allocation11 + $0x28] sm:$0xff]   ;;  %v1361_v22 = vld [vmem:[#allocation11 + $0x30] sm:$0xff]  }
  0xef   :  { %1180 = vmatmul.mubr.msk.bf16.vlgmr.msra.gmra.mrb[0].mxu0 %vm227_vm1, %v1997_v2  ;;  %v1362_v23 = vld [vmem:[#allocation11 + $0x38] sm:$0xff]   ;;  %v1363_v34 = vld [vmem:[#allocation13] sm:$0xff]   ;;  %v1364_v35 = vld [vmem:[#allocation13 + $0x8] sm:$0xff]   ;;  %p1692_p9 = por %p1691_p8, %p1690_p7 }
  0xf0   :  { %1225 = vmatprep.mubr.msk.bf16.mxu0 %vm1739_vm0, %v1738_v0  ;;  %1186 = vmatpush3.bf16.msra.mxu1 %v1348_v4  ;;  %v1063_v24 = vld [vmem:[#allocation10] ss:$0 sm:$0xff]  ;;  %v1365_v36 = vld [vmem:[#allocation13 + $0x10] sm:$0xff]   ;;  %v1367_v38 = vld [vmem:[#allocation13 + $0x20] sm:$0xff]  }
  0xf1   :  { %1187 = vmatprep.subr.bf16.mxu1 %v1738_v0  ;;  %v1366_v37 = vld [vmem:[#allocation13 + $0x18] sm:$0xff]   ;;  %v1368_v39 = vld [vmem:[#allocation13 + $0x28] sm:$0xff]   ;;  %v1369_v40 = vld [vmem:[#allocation13 + $0x30] sm:$0xff]   ;;  %p1693_p10 = pnand %p1692_p9, %p1686_p6 }
  0xf2   :  { %v1370_v41 = vld [vmem:[#allocation13 + $0x38] sm:$0xff]   ;;  %v1371_v45 = vld [vmem:[#allocation16] sm:$0xff]   ;;  %v1372_v48 = vld [vmem:[#allocation16 + $0x8] sm:$0xff]  }
  0xf3   :  { %v1373_v49 = vld [vmem:[#allocation16 + $0x10] sm:$0xff]   ;;  %v1374_v50 = vld [vmem:[#allocation16 + $0x18] sm:$0xff]   ;;  %v1375_v51 = vld [vmem:[#allocation16 + $0x20] sm:$0xff]  }
  0xf4   :  { %1188 = vmatpush3.bf16.msra.mxu1 %v1349_v5  ;;  %v1376_v52 = vld [vmem:[#allocation16 + $0x28] sm:$0xff]   ;;  %v1377_v53 = vld [vmem:[#allocation16 + $0x30] sm:$0xff]   ;;  %v1378_v54 = vld [vmem:[#allocation16 + $0x38] sm:$0xff]  }
  0xf5   :  { %1189 = vmatprep.subr.bf16.mxu1 %v1738_v0  ;;  %v1081_v55 = vld [vmem:[#allocation14] ss:$0 sm:$0xff] }
  0xf8   :  { %1190 = vmatpush3.bf16.msra.mxu1 %v1350_v6 }
  0xf9   :  { %1191 = vmatprep.subr.bf16.mxu1 %v1738_v0 }
  0xfc   :  { %1192 = vmatpush3.bf16.msra.mxu1 %v1351_v7 }
  0xfd   :  { %1193 = vmatprep.subr.bf16.mxu1 %v1738_v0 }
 0x100   :  { %1194 = vmatpush3.bf16.msra.mxu1 %v1352_v8 }
 0x101   :  { %1195 = vmatprep.subr.bf16.mxu1 %v1738_v0 }
 0x104   :  { %1196 = vmatpush3.bf16.msra.mxu1 %v1353_v9 }
 0x105   :  { %1197 = vmatprep.subr.bf16.mxu1 %v1738_v0 }
 0x108   :  { %1198 = vmatpush3.bf16.msra.mxu1 %v1354_v10  ;;  %v768_v10 = vld [vmem:[#allocation5] sm:$0xf] }
 0x109   :  { %1203 = vmatprep.subr.bf16.mxu1 %v1738_v0 }
 0x1c2   :  { %v265_v11 = vpop.f32.mrb[0].mxu0 }
 0x1c3   :  { %v1181_v12 = vpop.f32.mrb[1].mxu0 }
 0x1c4   :  { %v268_v13 = vpop.f32.mrb[2].mxu0  ;;  %v1380_v12 = vld [vmem:[#allocation17 + $0x8] sm:$0xff]  }
 0x1c5   :  { %v272_v15 = vpack.c.bf16 %v268_v13, %v265_v11  ;;  %v1182_v16 = vpop.f32.mrb[3].mxu0  ;;  %v1379_v11 = vld [vmem:[#allocation17] sm:$0xff]   ;;  %v1381_v13 = vld [vmem:[#allocation17 + $0x10] sm:$0xff]  }
 0x1c6   :  { %v1384_v16 = vld [vmem:[#allocation17 + $0x28] sm:$0xff]  }
 0x1c7   :  { %1200 = vmatmul.mubr.bf16.vlgmr.msra.gmra.mrb[0].mxu1 %v272_v15  ;;  %v1383_v15 = vld [vmem:[#allocation17 + $0x20] sm:$0xff]  }
 0x1c8   :  { %1204 = vmatpush3.bf16.msra.mxu1 %v1355_v14  ;;  %1219 = vmatprep.mubr.msk.bf16.mxu1 %vm1739_vm0, %v1738_v0  ;;  %v1382_v14 = vld [vmem:[#allocation17 + $0x18] sm:$0xff]  }
 0x1c9   :  { %1205 = vmatprep.subr.bf16.mxu1 %v1738_v0 }
 0x1cc   :  { %1206 = vmatpush3.bf16.msra.mxu1 %v1356_v17  ;;  %v1385_v17 = vld [vmem:[#allocation17 + $0x30] sm:$0xff]  }
 0x1cd   :  { %1207 = vmatprep.subr.bf16.mxu1 %v1738_v0 }
 0x1d0   :  { %1208 = vmatpush3.bf16.msra.mxu1 %v1357_v18  ;;  %v1386_v18 = vld [vmem:[#allocation17 + $0x38] sm:$0xff]  }
 0x1d1   :  { %1209 = vmatprep.subr.bf16.mxu1 %v1738_v0 }
 0x1d4   :  { %1210 = vmatpush3.bf16.msra.mxu1 %v1358_v19  ;;  %v1387_v19 = vld [vmem:[#allocation20] sm:$0xff]  }
 0x1d5   :  { %1211 = vmatprep.subr.bf16.mxu1 %v1738_v0 }
 0x1d8   :  { %1212 = vmatpush3.bf16.msra.mxu1 %v1359_v20  ;;  %v1388_v20 = vld [vmem:[#allocation20 + $0x8] sm:$0xff]  }
 0x1d9   :  { %1213 = vmatprep.subr.bf16.mxu1 %v1738_v0 }
 0x1dc   :  { %1214 = vmatpush3.bf16.msra.mxu1 %v1360_v21  ;;  %v1389_v21 = vld [vmem:[#allocation20 + $0x10] sm:$0xff]  }
 0x1dd   :  { %1215 = vmatprep.subr.bf16.mxu1 %v1738_v0 }
 0x1e0   :  { %1216 = vmatpush3.bf16.msra.mxu1 %v1361_v22  ;;  %v1390_v22 = vld [vmem:[#allocation20 + $0x18] sm:$0xff]  }
 0x1e1   :  { %1217 = vmatprep.subr.bf16.mxu1 %v1738_v0 }
 0x1e4   :  { %1218 = vmatpush3.bf16.msra.mxu1 %v1362_v23  ;;  %v1391_v23 = vld [vmem:[#allocation20 + $0x20] sm:$0xff]  }
 0x1e5   :  { %1269 = vmatprep.subr.bf16.mxu1 %v1738_v0 }
 0x1e7   :  { %1220 = vmatmul.mubr.bf16.vlgmr.msra.gmra.mrb[0].mxu1 %v1345_v1 }
 0x1e8   :  { %1271 = vmatprep.mubr.msk.bf16.mxu1 %vm1739_vm0, %v1738_v0 }
 0x2ba   :  { %v483_v25 = vpop.f32.mrb[0].mxu1 }
 0x2bb   :  { %v1315_v26 = vadd.f32 %v1063_v24, %v483_v25  ;;  %v1221_v27 = vpop.f32.mrb[1].mxu1 }
 0x2bc   :  { %v486_v28 = vpop.f32.mrb[2].mxu1 }
 0x2bd   :  { %v1316_v29 = vadd.f32 %v1063_v24, %v486_v28  ;;  %v1222_v30 = vpop.f32.mrb[3].mxu1  ;;  %v492_v31 = vmax.f32 %v1315_v26, 0.0  ;;  %v1392_v24 = vld [vmem:[#allocation20 + $0x28] sm:$0xff]  }
 0x2be   :  { %v1393_v30 = vld [vmem:[#allocation20 + $0x30] sm:$0xff]  }
 0x2bf   :  { %v493_v32 = vmax.f32 %v1316_v29, 0.0 }
 0x2c1   :  { %v494_v33 = vpack.c.bf16 %v493_v32, %v492_v31  ;;  %v1394_v31 = vld [vmem:[#allocation20 + $0x38] sm:$0xff]  }
 0x2c2   :  { %v1099_v32 = vld [vmem:[#allocation19] ss:$0 sm:$0xff] }
 0x2c3   :  { %1224 = vmatpush3.bf16.msra.mxu0 %v494_v33 }
 0x2c4   :  { %1229 = vmatprep.subr.bf16.mxu0 %v1738_v0 }
 0x2c6   :  { %1226 = vmatmul.mubr.msk.bf16.vlgmr.msra.gmra.mrb[4].mxu0 %vm227_vm1, %v1997_v2 }
 0x2c7   :  { %1230 = vmatpush3.bf16.msra.mxu0 %v1363_v34  ;;  %1245 = vmatprep.mubr.msk.bf16.mxu0 %vm1739_vm0, %v1738_v0 }
 0x2c8   :  { %1231 = vmatprep.subr.bf16.mxu0 %v1738_v0 }
 0x2cb   :  { %1232 = vmatpush3.bf16.msra.mxu0 %v1364_v35 }
 0x2cc   :  { %1233 = vmatprep.subr.bf16.mxu0 %v1738_v0 }
 0x2cf   :  { %1234 = vmatpush3.bf16.msra.mxu0 %v1365_v36 }
 0x2d0   :  { %1235 = vmatprep.subr.bf16.mxu0 %v1738_v0 }
 0x2d3   :  { %1236 = vmatpush3.bf16.msra.mxu0 %v1366_v37 }
 0x2d4   :  { %1237 = vmatprep.subr.bf16.mxu0 %v1738_v0 }
 0x2d7   :  { %1238 = vmatpush3.bf16.msra.mxu0 %v1367_v38 }
 0x2d8   :  { %1239 = vmatprep.subr.bf16.mxu0 %v1738_v0 }
 0x2db   :  { %1240 = vmatpush3.bf16.msra.mxu0 %v1368_v39 }
 0x2dc   :  { %1241 = vmatprep.subr.bf16.mxu0 %v1738_v0 }
 0x2df   :  { %1242 = vmatpush3.bf16.msra.mxu0 %v1369_v40  ;;  %v1108_v40 = vld [vmem:[#allocation22] ss:$0 sm:$0xff] }
 0x2e0   :  { %1243 = vmatprep.subr.bf16.mxu0 %v1738_v0 }
 0x2e3   :  { %1244 = vmatpush3.bf16.msra.mxu0 %v1370_v41 }
 0x2e4   :  { %1249 = vmatprep.subr.bf16.mxu0 %v1738_v0 }
 0x399   :  { %v529_v42 = vpop.f32.mrb[4].mxu0 }
 0x39a   :  { %v1227_v43 = vpop.f32.mrb[5].mxu0 }
 0x39b   :  { %v532_v44 = vpop.f32.mrb[6].mxu0 }
 0x39c   :  { %v536_v46 = vpack.c.bf16 %v532_v44, %v529_v42  ;;  %v1228_v47 = vpop.f32.mrb[7].mxu0 }
 0x39e   :  { %1246 = vmatmul.mubr.bf16.vlgmr.msra.gmra.mrb[8].mxu0 %v536_v46 }
 0x39f   :  { %1250 = vmatpush3.bf16.msra.mxu0 %v1371_v45  ;;  %1265 = vmatprep.mubr.msk.bf16.mxu0 %vm1739_vm0, %v1738_v0 }
 0x3a0   :  { %1251 = vmatprep.subr.bf16.mxu0 %v1738_v0 }
 0x3a3   :  { %1252 = vmatpush3.bf16.msra.mxu0 %v1372_v48 }
 0x3a4   :  { %1253 = vmatprep.subr.bf16.mxu0 %v1738_v0 }
 0x3a7   :  { %1254 = vmatpush3.bf16.msra.mxu0 %v1373_v49 }
 0x3a8   :  { %1255 = vmatprep.subr.bf16.mxu0 %v1738_v0 }
 0x3ab   :  { %1256 = vmatpush3.bf16.msra.mxu0 %v1374_v50 }
 0x3ac   :  { %1257 = vmatprep.subr.bf16.mxu0 %v1738_v0 }
 0x3af   :  { %1258 = vmatpush3.bf16.msra.mxu0 %v1375_v51 }
 0x3b0   :  { %1259 = vmatprep.subr.bf16.mxu0 %v1738_v0 }
 0x3b3   :  { %1260 = vmatpush3.bf16.msra.mxu0 %v1376_v52 }
 0x3b4   :  { %1261 = vmatprep.subr.bf16.mxu0 %v1738_v0 }
 0x3b7   :  { %1262 = vmatpush3.bf16.msra.mxu0 %v1377_v53 }
 0x3b8   :  { %1263 = vmatprep.subr.bf16.mxu0 %v1738_v0 }
 0x3bb   :  { %1264 = vmatpush3.bf16.msra.mxu0 %v1378_v54 }
 0x3bc   :  { %1295 = vmatprep.subr.bf16.mxu0 %v1738_v0 }
 0x3be   :  { %1266 = vmatmul.mubr.bf16.vlgmr.msra.gmra.mrb[8].mxu0 %v494_v33 }
 0x3bf   :  { %1311 = vmatprep.mubr.msk.bf16.mxu0 %vm1739_vm0, %v1738_v0  ;;  %1296 = vmatpush3.bf16.msra.mxu0 %v1387_v19 }
 0x3c0   :  { %1297 = vmatprep.subr.bf16.mxu0 %v1738_v0 }
 0x3c3   :  { %1298 = vmatpush3.bf16.msra.mxu0 %v1388_v20 }
 0x3c4   :  { %1299 = vmatprep.subr.bf16.mxu0 %v1738_v0 }
 0x3c7   :  { %1300 = vmatpush3.bf16.msra.mxu0 %v1389_v21 }
 0x3c8   :  { %1301 = vmatprep.subr.bf16.mxu0 %v1738_v0 }
 0x3cb   :  { %1302 = vmatpush3.bf16.msra.mxu0 %v1390_v22 }
 0x3cc   :  { %1303 = vmatprep.subr.bf16.mxu0 %v1738_v0 }
 0x3cf   :  { %1304 = vmatpush3.bf16.msra.mxu0 %v1391_v23 }
 0x3d0   :  { %1305 = vmatprep.subr.bf16.mxu0 %v1738_v0 }
 0x3d3   :  { %1306 = vmatpush3.bf16.msra.mxu0 %v1392_v24 }
 0x3d4   :  { %1307 = vmatprep.subr.bf16.mxu0 %v1738_v0 }
 0x3d7   :  { %1308 = vmatpush3.bf16.msra.mxu0 %v1393_v30 }
 0x3d8   :  { %1309 = vmatprep.subr.bf16.mxu0 %v1738_v0 }
 0x3db   :  { %1310 = vmatpush3.bf16.msra.mxu0 %v1394_v31 }
 0x491   :  { %v747_v56 = vpop.f32.mrb[8].mxu0 }
 0x492   :  { %v1317_v57 = vadd.f32 %v1081_v55, %v747_v56  ;;  %v1267_v58 = vpop.f32.mrb[9].mxu0 }
 0x493   :  { %v750_v59 = vpop.f32.mrb[10].mxu0 }
 0x494   :  { %v1318_v60 = vadd.f32 %v1081_v55, %v750_v59  ;;  %v1268_v61 = vpop.f32.mrb[11].mxu0  ;;  %v756_v62 = vmul.f32 %v1317_v57, %v1317_v57 }
 0x496   :  { %758 = vadd.xlane.f32.xlu0 %v756_v62  ;;  %v757_v63 = vmul.f32 %v1318_v60, %v1318_v60 }
 0x49a   :  { %760 = vadd.xlane.f32.xlu0 %v757_v63 }
 0x523   :  { %v759_v1 = vpop.xlane.xlu0 %758 }
 0x524   :  { %v762_v2 = vmax.f32 %v759_v1, 1e-24 }
 0x526   :  { %1395 = vrsqrt.f32 %v762_v2 }
 0x527   :  { %v761_v3 = vpop.xlane.xlu0 %760 }
 0x528   :  { %v763_v4 = vmax.f32 %v761_v3, 1e-24 }
 0x52a   :  { %1397 = vrsqrt.f32 %v763_v4 }
 0x530   :  { %v1396_v5 = vpop.eup %1395 }
 0x531   :  { %v766_v7 = vmul.f32 %v1396_v5, %v1317_v57 }
 0x534   :  { %v1398_v6 = vpop.eup %1397 }
 0x535   :  { %v767_v8 = vmul.f32 %v1398_v6, %v1318_v60 }
 0x537   :  { %v769_v9 = vpack.c.bf16 %v767_v8, %v766_v7 }
 0x539   :  { %1270 = vmatpush3.bf16.msra.mxu1 %v769_v9 }
 0x53a   :  { %1275 = vmatprep.subr.bf16.mxu1 %v1738_v0 }
 0x53c   :  { %1272 = vmatmul.mubr.msk.bf16.vlgmr.msra.gmra.mrb[4].mxu1 %vm227_vm1, %v768_v10 }
 0x53d   :  { %1276 = vmatpush3.bf16.msra.mxu1 %v1379_v11  ;;  %1291 = vmatprep.mubr.msk.bf16.mxu1 %vm1739_vm0, %v1738_v0 }
 0x53e   :  { %1277 = vmatprep.subr.bf16.mxu1 %v1738_v0 }
 0x541   :  { %1278 = vmatpush3.bf16.msra.mxu1 %v1380_v12 }
 0x542   :  { %1279 = vmatprep.subr.bf16.mxu1 %v1738_v0 }
 0x545   :  { %1280 = vmatpush3.bf16.msra.mxu1 %v1381_v13 }
 0x546   :  { %1281 = vmatprep.subr.bf16.mxu1 %v1738_v0 }
 0x549   :  { %1282 = vmatpush3.bf16.msra.mxu1 %v1382_v14 }
 0x54a   :  { %1283 = vmatprep.subr.bf16.mxu1 %v1738_v0 }
 0x54d   :  { %1284 = vmatpush3.bf16.msra.mxu1 %v1383_v15 }
 0x54e   :  { %1285 = vmatprep.subr.bf16.mxu1 %v1738_v0 }
 0x551   :  { %1286 = vmatpush3.bf16.msra.mxu1 %v1384_v16 }
 0x552   :  { %1287 = vmatprep.subr.bf16.mxu1 %v1738_v0 }
 0x555   :  { %1288 = vmatpush3.bf16.msra.mxu1 %v1385_v17 }
 0x556   :  { %1289 = vmatprep.subr.bf16.mxu1 %v1738_v0 }
 0x559   :  { %1290 = vmatpush3.bf16.msra.mxu1 %v1386_v18 }
 0x60f   :  { %v807_v25 = vpop.f32.mrb[4].mxu1 }
 0x610   :  { %v813_v26 = vpack.c.bf16 %v807_v25, %v807_v25  ;;  %v1273_v27 = vpop.f32.mrb[5].mxu1 }
 0x611   :  { %v810_v28 = vpop.f32.mrb[6].mxu1 }
 0x612   :  { %v1274_v29 = vpop.f32.mrb[7].mxu1  ;;  %1292 = vmatmul.mubr.bf16.vlgmr.msra.gmra.mrb[8].mxu1 %v813_v26 }
 0x6e5   :  { %v919_v33 = vpop.f32.mrb[8].mxu1 }
 0x6e6   :  { %v920_v34 = vadd.f32 %v1099_v32, %v919_v33  ;;  %v1293_v35 = vpop.f32.mrb[9].mxu1 }
 0x6e7   :  { %v922_v36 = vpop.f32.mrb[10].mxu1 }
 0x6e8   :  { %v925_v37 = vmax.f32 %v920_v34, 0.0  ;;  %v1294_v38 = vpop.f32.mrb[11].mxu1 }
 0x6ea   :  { %v926_v39 = vpack.c.bf16 %v925_v37, %v925_v37 }
 0x6ec   :  { %1312 = vmatmul.mubr.bf16.vlgmr.msra.gmra.mrb[12].mxu0 %v926_v39 }
 0x7bf   :  { %v1032_v41 = vpop.f32.mrb[12].mxu0 }
 0x7c0   :  { %v1033_v42 = vadd.f32 %v1108_v40, %v1032_v41  ;;  %v1313_v43 = vpop.f32.mrb[13].mxu0 }
 0x7c1   :  { %v1035_v44 = vpop.f32.mrb[14].mxu0 }
 0x7c2   :  { %1038 = vst [vmem:[#allocation23] sm:$0xff] %v1033_v42  ;;  %v1314_v0 = vpop.f32.mrb[15].mxu0 }
 0x7c3   :  { %1696 = shalt.err (!%p1693_p10)
}
 0x7c4   :  { %s1697_s25 = scalar_lea.hbm %s2092_s13, 128 }
 0x7c5   :  { %p1698_p11 = scmp.ne.s32.totalorder %s2092_s13, %s1697_s25  ;;  %p1701_p12 = scmp.lt.u32.totalorder %s1697_s25, %s2092_s13 }
 0x7c7   :  { %p1703_p13 = pnand %p1701_p12, %p1698_p11 }
 0x7c9   :  { %1706 = shalt.err (!%p1703_p13)
}
 0x7ca   :  { %1048 = dma.vmem_to_hbm [thread:$0]  %s1046_s5, 128, %s2092_s13, [#allocation4]  }
 0x7cb   :  { %1721 = dma.done.wait [#allocation4], 128  }
 0x7cc   :  { %1722 = vsyncadd [#allocation4], 4294967168 }
 0x7cd   :  { %1052 = vsyncpa [#allocation3], 1 }
 0x7ce   :  { %1053 = vsyncpa [#allocation6], 1 }
 0x7cf   :  { %1054 = vsyncpa [#allocation9], 1 }
 0x7d0   :  { %1055 = vsyncpa [#allocation12], 1 }
 0x7d1   :  { %1056 = vsyncpa [#allocation15], 1 }
 0x7d2   :  { %1057 = vsyncpa [#allocation18], 1 }
 0x7d3   :  { %1058 = vsyncpa [#allocation21], 1 }
 0x7d4   :  { %1059 = vsyncpa [#allocation4], 1 }

</bundles_post_ra>
